<compile_context>
chip_gen: v5e
topology: v5e:2x2
jax: 0.10.0
libtpu: 0.0.40
codegen_flags: <defaults>
</compile_context>

<pallas_src>
import functools
import math

import jax
import jax.numpy as jnp
from jax.experimental import pallas as pl
from jax.experimental.pallas import tpu as pltpu


# ----------------------------------------------------------------------------- helpers
def _layer_norm(x, gamma, beta, eps=1e-6):
    mu = jnp.mean(x, axis=-1, keepdims=True)
    var = jnp.mean(jnp.square(x - mu), axis=-1, keepdims=True)
    return (x - mu) * jax.lax.rsqrt(var + eps) * gamma + beta


def _nbytes(shape, dtype):
    return math.prod(shape) * jnp.dtype(dtype).itemsize


def _vmem_caps():
    """(tile-sizing budget, compiler vmem limit) derived from the actual chip."""
    try:
        cap = int(pltpu.get_tpu_info().vmem_capacity_bytes)
    except Exception:
        cap = 64 * 2**20                      # conservative (v7x per-TC VMEM)
    cap = max(cap, 32 * 2**20)
    return int(0.65 * cap), int(0.80 * cap)


def _pick_row_tile(n_rows, bytes_fn, budget, min_grid=2):
    """Largest divisor of n_rows whose per-step footprint fits the budget,
    preferring >=min_grid grid steps (megacore / pipelining)."""
    divs = [g for g in range(1, n_rows + 1) if n_rows % g == 0]
    fit = [g for g in divs if bytes_fn(g) <= budget] or [1]
    pref = [g for g in fit if n_rows // g >= min_grid] or fit
    return max(pref)


# ----------------------------------------------------------------------------- kernel 1
def _pool_kernel(x_ref, ml_ref, g1_ref, b1_ref, wk_ref, bk_ref, wv_ref, bv_ref,
                 ehd_ref, edh_ref, g2_ref, b2_ref, out_ref, *, dh):
    x = x_ref[...].astype(jnp.float32)                        # [G, T, D]  (bf16 in HBM)
    G, T, D = x.shape

    # additive key-padding bias, built once per step (not per head)
    mbias = jnp.where(ml_ref[...][:, 0, :] != 0, -1e18, 0.0)  # [G, T]

    xn = _layer_norm(x, g1_ref[...], b1_ref[...])             # [G, T, D]
    xf = xn.reshape(G * T, D).astype(jnp.bfloat16)

    # pooling projections (bf16 MXU operands, f32 accumulation)
    s = jnp.dot(xf, wk_ref[...], preferred_element_type=jnp.float32) + bk_ref[...]    # [G*T, H]
    vals = jnp.dot(xf, wv_ref[...], preferred_element_type=jnp.float32) + bv_ref[...]  # [G*T, D]

    H = s.shape[-1]
    s3 = s.reshape(G, T, H) + mbias[:, :, None]               # [G, T, H]
    m = jnp.max(s3, axis=1, keepdims=True)
    e = jnp.exp(s3 - m)
    z = jnp.sum(e, axis=1, keepdims=True)
    attn = e * pl.reciprocal(z, approx=True)                  # softmax over tokens

    # expand per-head attention weights to the full feature dim with a 0/1 matrix
    # (keeps the big [G*T, D] tensor lane-contiguous; no per-head slicing/concat).
    aexp = jnp.dot(attn.reshape(G * T, H), ehd_ref[...],
                   preferred_element_type=jnp.float32)        # [G*T, D]
    ctx = jnp.sum((aexp * vals).reshape(G, T, D), axis=1)     # [G, D]

    # LayerNorm over each d_per_head chunk via the tiny 0/1 matrices (feature dim
    # stays lane-contiguous; stat dots run at default TPU matmul precision).
    inv_dh = 1.0 / dh
    mean_h = jnp.dot(ctx, edh_ref[...], preferred_element_type=jnp.float32) * inv_dh   # [G, H]
    mean_f = jnp.dot(mean_h, ehd_ref[...], preferred_element_type=jnp.float32)          # [G, D]
    cen = ctx - mean_f
    var_h = jnp.dot(cen * cen, edh_ref[...], preferred_element_type=jnp.float32) * inv_dh
    rstd_f = jnp.dot(jax.lax.rsqrt(var_h + 1e-6), ehd_ref[...],
                     preferred_element_type=jnp.float32)
    res = cen * rstd_f * g2_ref[...] + b2_ref[...]            # [G, D]
    out_ref[...] = res[:, None, :].astype(out_ref.dtype)


# ----------------------------------------------------------------------------- kernel 2
def _inter_att_kernel(bv_ref, mi_ref, wq_ref, bq_ref, wk_ref, bk_ref, wv_ref, bvv_ref,
                      ehd_ref, edh_ref, out_ref, *, scale):
    bv = bv_ref[0].astype(jnp.bfloat16)                       # [NB, D] lane-dense
    NB, D = bv.shape

    # block-diagonal per-head projections: one D-wide matmul each (bf16, f32 acc)
    q = (jnp.dot(bv, wq_ref[...], preferred_element_type=jnp.float32) + bq_ref[...]) * scale
    k = jnp.dot(bv, wk_ref[...], preferred_element_type=jnp.float32) + bk_ref[...]
    v = jnp.dot(bv, wv_ref[...], preferred_element_type=jnp.float32) + bvv_ref[...]

    # per-head scores: lane-product + 0/1 head-sum keeps D on the lane axis
    # (no lane-splitting reshapes, no per-head slicing).
    prod = q[:, None, :] * k[None, :, :]                      # [NBq, NBk, D]
    s = jnp.dot(prod.reshape(NB * NB, D), edh_ref[...],
                preferred_element_type=jnp.float32).reshape(NB, NB, -1)   # [NBq, NBk, H]

    bias = jnp.where(mi_ref[0] != 0, -1e18, 0.0)              # [NBk, 1] key-padding bias
    s = s + bias[None, :, :]                                  # broadcast over queries & heads

    m = jnp.max(s, axis=1, keepdims=True)                     # softmax over key blocks
    e = jnp.exp(s - m)
    z = jnp.sum(e, axis=1, keepdims=True)
    attn = e * pl.reciprocal(z, approx=True)                  # [NBq, NBk, H]

    aexp = jnp.dot(attn.reshape(NB * NB, -1), ehd_ref[...],
                   preferred_element_type=jnp.float32).reshape(NB, NB, D)
    ctx = jnp.sum(aexp * v[None, :, :], axis=1)               # [NBq, D]  (head-major lanes)
    out_ref[0] = ctx.astype(out_ref.dtype)                    # full-D lane-dense store


# ----------------------------------------------------------------------------- kernel 3
def _ffn_kernel(x_ref, bv_ref, wl_ref, bl_ref, g3_ref, b3_ref,
                w1_ref, b1_ref, w2_ref, b2_ref, out_ref):
    x = x_ref[...].astype(jnp.float32)                        # [G, T, D]  (bf16 in HBM)
    G, T, D = x.shape
    bvec = bv_ref[...][:, 0, :].astype(jnp.bfloat16)          # [G, D]

    blk = jnp.dot(bvec, wl_ref[...], preferred_element_type=jnp.float32) + bl_ref[...]  # [G, D]
    x2 = x + blk[:, None, :]                                  # broadcast over tokens

    hn = _layer_norm(x2, g3_ref[...], b3_ref[...])
    hf = hn.reshape(G * T, D).astype(jnp.bfloat16)
    inter = jnp.maximum(
        jnp.dot(hf, w1_ref[...], preferred_element_type=jnp.float32) + b1_ref[...], 0.0)
    ffn = jnp.dot(inter.astype(jnp.bfloat16), w2_ref[...],
                  preferred_element_type=jnp.float32) + b2_ref[...]
    out_ref[...] = (ffn.reshape(G, T, D) + x2).astype(out_ref.dtype)


# ----------------------------------------------------------------------------- wrapper
def transformer_inter_layer(inputs, mask_local, mask_inter, params, *,
                            heads, batch_size, n_blocks):
    """inputs: [batch*n_blocks, n_tokens, d_model]; mask_local: [batch*n_blocks, n_tokens];
    mask_inter: [batch, n_blocks].  Nonzero mask entries are padding."""
    BN, T, D = inputs.shape
    assert BN == batch_size * n_blocks
    dh = D // heads
    F = params["ffn_w1"].shape[1]
    f32, bf16 = jnp.float32, jnp.bfloat16

    # dominant activation stream stays bf16 in HBM; compute is f32 inside kernels.
    x = inputs if inputs.dtype == bf16 else inputs.astype(bf16)
    out_dtype = inputs.dtype

    # bf16 weights for the MXU; biases / LayerNorm params stay f32.
    wkp = params["pool_k_w"].astype(bf16)
    wvp = params["pool_v_w"].astype(bf16)
    wl = params["lin_w"].astype(bf16)
    w1 = params["ffn_w1"].astype(bf16)
    w2 = params["ffn_w2"].astype(bf16)

    # inter-attention: block-diagonal per-head weights (same [dh,dh] applied to every
    # head's lane slice) + head-tiled biases, so K2 works on lane-dense [NB, D] rows.
    eye_h = jnp.eye(heads, dtype=f32)
    wq_bd = jnp.kron(eye_h, params["att_q_w"]).astype(bf16)    # [D, D]
    wk_bd = jnp.kron(eye_h, params["att_k_w"]).astype(bf16)
    wv_bd = jnp.kron(eye_h, params["att_v_w"]).astype(bf16)
    bq_t = jnp.tile(params["att_q_b"], (1, heads))             # [1, D]
    bk_t = jnp.tile(params["att_k_b"], (1, heads))
    bv_t = jnp.tile(params["att_v_b"], (1, heads))

    # 0/1 head-expansion matrices and head-tiled LayerNorm2 params (layout prep only).
    e_hd = (jnp.arange(D, dtype=jnp.int32)[None, :] // dh
            == jnp.arange(heads, dtype=jnp.int32)[:, None]).astype(f32)   # [H, D]
    e_dh = e_hd.T                                                          # [D, H]
    g2t = jnp.tile(params["ln2_g"], (1, heads))                            # [1, D]
    b2t = jnp.tile(params["ln2_b"], (1, heads))

    ml = mask_local.astype(jnp.int32).reshape(BN, 1, T)
    mi = mask_inter.astype(jnp.int32).reshape(batch_size, n_blocks, 1)

    rep = lambda arr: pl.BlockSpec(arr.shape, lambda *_: (0,) * arr.ndim)
    tile_budget, vmem_limit = _vmem_caps()

    # ---- Kernel 1: masked multi-headed pooling + per-head LayerNorm -------------
    def k1_bytes(g):
        io = (2 * _nbytes((g, T, D), bf16) + 2 * _nbytes((g, 1, T), jnp.int32)
              + 2 * _nbytes((g, 1, D), f32))                              # double-buffered blocks
        tmp = (4 * _nbytes((g, T, D), f32) + _nbytes((g, T, D), bf16)     # x, xn, vals, aexp, xf
               + 4 * _nbytes((g, T, heads), f32))                         # scores/softmax temps
        fixed = 2 * (_nbytes((D, heads), bf16) + _nbytes((D, D), bf16)
                     + 2 * _nbytes((heads, D), f32) + 8 * _nbytes((1, D), f32))
        return io + tmp + fixed

    G1 = _pick_row_tile(BN, k1_bytes, tile_budget)
    block_vec = pl.pallas_call(
        functools.partial(_pool_kernel, dh=dh),
        out_shape=jax.ShapeDtypeStruct((BN, 1, D), f32),
        grid_spec=pltpu.PrefetchScalarGridSpec(
            num_scalar_prefetch=0,
            grid=(BN // G1,),
            in_specs=[
                pl.BlockSpec((G1, T, D), lambda i: (i, 0, 0)),
                pl.BlockSpec((G1, 1, T), lambda i: (i, 0, 0)),
                rep(params["ln1_g"]), rep(params["ln1_b"]),
                rep(wkp), rep(params["pool_k_b"]),
                rep(wvp), rep(params["pool_v_b"]),
                rep(e_hd), rep(e_dh),
                rep(g2t), rep(b2t),
            ],
            out_specs=pl.BlockSpec((G1, 1, D), lambda i: (i, 0, 0)),
        ),
        compiler_params=pltpu.CompilerParams(
            dimension_semantics=("parallel",),
            vmem_limit_bytes=vmem_limit),
    )(x, ml, params["ln1_g"], params["ln1_b"], wkp, params["pool_k_b"],
      wvp, params["pool_v_b"], e_hd, e_dh, g2t, b2t)

    # leading-dim reshape only (no transposes, no narrow-lane tensors)
    bv3 = block_vec.reshape(batch_size, n_blocks, D)                       # [B, NB, D]

    # ---- Kernel 2: 1-head inter-block attention (lane-dense, per batch) ----------
    ictx = pl.pallas_call(
        functools.partial(_inter_att_kernel, scale=1.0 / math.sqrt(dh)),
        out_shape=jax.ShapeDtypeStruct((batch_size, n_blocks, D), f32),
        grid_spec=pltpu.PrefetchScalarGridSpec(
            num_scalar_prefetch=0,
            grid=(batch_size,),
            in_specs=[
                pl.BlockSpec((1, n_blocks, D), lambda b: (b, 0, 0)),
                pl.BlockSpec((1, n_blocks, 1), lambda b: (b, 0, 0)),
                rep(wq_bd), rep(bq_t),
                rep(wk_bd), rep(bk_t),
                rep(wv_bd), rep(bv_t),
                rep(e_hd), rep(e_dh),
            ],
            out_specs=pl.BlockSpec((1, n_blocks, D), lambda b: (b, 0, 0)),
        ),
        compiler_params=pltpu.CompilerParams(
            dimension_semantics=("parallel",),
            vmem_limit_bytes=vmem_limit),
    )(bv3, mi, wq_bd, bq_t, wk_bd, bk_t, wv_bd, bv_t, e_hd, e_dh)

    blk_in = ictx.reshape(BN, 1, D)                                        # [BN, 1, D]

    # ---- Kernel 3: block linear + broadcast residual + FeedForward ---------------
    def k3_bytes(g):
        io = (2 * _nbytes((g, T, D), bf16) + 2 * _nbytes((g, 1, D), f32)
              + 2 * _nbytes((g, T, D), out_dtype))
        tmp = (4 * _nbytes((g, T, D), f32) + _nbytes((g, T, D), bf16)      # x, x2, hn, ffn, hf
               + _nbytes((g, T, F), f32) + _nbytes((g, T, F), bf16))       # inter (+bf16 cast)
        fixed = 2 * (_nbytes((D, D), bf16) + 2 * _nbytes((D, F), bf16)
                     + 8 * _nbytes((1, max(D, F)), f32))
        return io + tmp + fixed

    G3 = _pick_row_tile(BN, k3_bytes, tile_budget)
    out = pl.pallas_call(
        _ffn_kernel,
        out_shape=jax.ShapeDtypeStruct((BN, T, D), out_dtype),
        grid_spec=pltpu.PrefetchScalarGridSpec(
            num_scalar_prefetch=0,
            grid=(BN // G3,),
            in_specs=[
                pl.BlockSpec((G3, T, D), lambda i: (i, 0, 0)),
                pl.BlockSpec((G3, 1, D), lambda i: (i, 0, 0)),
                rep(wl), rep(params["lin_b"]),
                rep(params["ln3_g"]), rep(params["ln3_b"]),
                rep(w1), rep(params["ffn_b1"]),
                rep(w2), rep(params["ffn_b2"]),
            ],
            out_specs=pl.BlockSpec((G3, T, D), lambda i: (i, 0, 0)),
        ),
        compiler_params=pltpu.CompilerParams(
            dimension_semantics=("parallel",),
            vmem_limit_bytes=vmem_limit),
    )(x, blk_in, wl, params["lin_b"], params["ln3_g"], params["ln3_b"],
      w1, params["ffn_b1"], w2, params["ffn_b2"])

    return out


# ----------------------------------------------------------------------------- reference
def _reference(inputs, mask_local, mask_inter, params, *, heads, batch_size, n_blocks):
    """Pure-JAX f32 mirror of the PyTorch TransformerInterLayer forward."""
    BN, T, D = inputs.shape
    dh = D // heads
    x = inputs.astype(jnp.float32)

    def ln(v, g, b, eps=1e-6):
        mu = jnp.mean(v, -1, keepdims=True)
        var = jnp.mean((v - mu) ** 2, -1, keepdims=True)
        return (v - mu) / jnp.sqrt(var + eps) * g + b

    wv = ln(x, params["ln1_g"], params["ln1_b"])                       # [BN, T, D]
    scores = wv @ params["pool_k_w"] + params["pool_k_b"]              # [BN, T, H]
    vals = wv @ params["pool_v_w"] + params["pool_v_b"]                # [BN, T, D]
    scores = jnp.where(mask_local[:, :, None] != 0, -1e18, scores)
    attn = jax.nn.softmax(scores, axis=1)                              # softmax over tokens
    vals4 = vals.reshape(BN, T, heads, dh)
    ctx = jnp.sum(attn[:, :, :, None] * vals4, axis=1)                 # [BN, H, dh]
    ctx = ln(ctx, params["ln2_g"], params["ln2_b"])

    bv = (ctx.reshape(batch_size, n_blocks, heads, dh)
          .transpose(0, 2, 1, 3).reshape(batch_size * heads, n_blocks, dh))
    q = (bv @ params["att_q_w"] + params["att_q_b"]) / math.sqrt(dh)
    k = bv @ params["att_k_w"] + params["att_k_b"]
    v = bv @ params["att_v_w"] + params["att_v_b"]
    s = jnp.einsum("bqd,bkd->bqk", q, k)
    mi = jnp.broadcast_to(mask_inter[:, None, :], (batch_size, heads, n_blocks))
    mi = mi.reshape(batch_size * heads, 1, n_blocks)
    s = jnp.where(mi != 0, -1e18, s)
    a = jax.nn.softmax(s, axis=-1)
    ic = jnp.einsum("bqk,bkd->bqd", a, v)
    ic = (ic.reshape(batch_size, heads, n_blocks, dh)
          .transpose(0, 2, 1, 3).reshape(BN, D))

    blk = ic @ params["lin_w"] + params["lin_b"]                       # [BN, D]
    x2 = x + blk[:, None, :]
    hn = ln(x2, params["ln3_g"], params["ln3_b"])
    inter = jax.nn.relu(hn @ params["ffn_w1"] + params["ffn_b1"])
    return inter @ params["ffn_w2"] + params["ffn_b2"] + x2


# ----------------------------------------------------------------------------- demo
if __name__ == "__main__":
    B, NB, T, D, H, F = 2, 4, 8, 32, 4, 64        # batch, blocks, tokens, d_model, heads, d_ff
    dh = D // H
    BN = B * NB

    key = jax.random.PRNGKey(0)
    ks = jax.random.split(key, 24)

    def rnd(k, shape, scale=0.1):
        return jax.random.normal(k, shape, dtype=jnp.float32) * scale

    # PyTorch Linear weights are [out, in]; stored here transposed as [in, out].
    params = {
        "ln1_g": 1.0 + rnd(ks[17], (1, D)), "ln1_b": rnd(ks[18], (1, D)),
        "pool_k_w": rnd(ks[0], (D, H)), "pool_k_b": rnd(ks[1], (1, H)),
        "pool_v_w": rnd(ks[2], (D, D)), "pool_v_b": rnd(ks[3], (1, D)),
        "ln2_g": 1.0 + rnd(ks[19], (1, dh)), "ln2_b": rnd(ks[20], (1, dh)),
        "att_q_w": rnd(ks[4], (dh, dh)), "att_q_b": rnd(ks[5], (1, dh)),
        "att_k_w": rnd(ks[6], (dh, dh)), "att_k_b": rnd(ks[7], (1, dh)),
        "att_v_w": rnd(ks[8], (dh, dh)), "att_v_b": rnd(ks[9], (1, dh)),
        "lin_w": rnd(ks[10], (D, D)), "lin_b": rnd(ks[11], (1, D)),
        "ln3_g": 1.0 + rnd(ks[21], (1, D)), "ln3_b": rnd(ks[22], (1, D)),
        "ffn_w1": rnd(ks[12], (D, F)), "ffn_b1": rnd(ks[13], (1, F)),
        "ffn_w2": rnd(ks[14], (F, D)), "ffn_b2": rnd(ks[15], (1, D)),
    }

    # activation stream presented in bf16 (what the kernel streams from HBM)
    inputs = rnd(ks[16], (BN, T, D), scale=1.0).astype(jnp.bfloat16)

    # token-level padding inside each block (nonzero == padded token)
    tok_len = jnp.array([[8, 6, 5, 7], [7, 8, 4, 0]], dtype=jnp.int32)     # [B, NB]
    mask_local = (jnp.arange(T, dtype=jnp.int32)[None, None, :]
                  >= tok_len[:, :, None]).astype(jnp.int32).reshape(BN, T)
    # block-level padding (nonzero == padded block)
    valid_blocks = jnp.array([4, 3], dtype=jnp.int32)
    mask_inter = (jnp.arange(NB, dtype=jnp.int32)[None, :]
                  >= valid_blocks[:, None]).astype(jnp.int32)

    out = transformer_inter_layer(inputs, mask_local, mask_inter, params,
                                  heads=H, batch_size=B, n_blocks=NB)
    out = jax.block_until_ready(out)

    ref = _reference(inputs, mask_local, mask_inter, params,
                     heads=H, batch_size=B, n_blocks=NB)

    assert out.shape == (BN, T, D)
    out_f32 = out.astype(jnp.float32)
    err = float(jnp.max(jnp.abs(out_f32 - ref)))
    assert jnp.allclose(out_f32, ref, rtol=2e-2, atol=2e-2), (
        "mismatch vs reference, max abs err = %f" % err)
    print("KERNEL_OK")
</pallas_src>

<mosaic_0001>
module attributes {stable_mosaic.version = 11 : i64} {
  func.func @_pool_kernel(%arg0: i32, %arg1: memref<4x8x32xbf16, #tpu.memory_space<vmem>>, %arg2: memref<4x1x8xi32, #tpu.memory_space<vmem>>, %arg3: memref<1x32xf32, #tpu.memory_space<vmem>>, %arg4: memref<1x32xf32, #tpu.memory_space<vmem>>, %arg5: memref<32x4xbf16, #tpu.memory_space<vmem>>, %arg6: memref<1x4xf32, #tpu.memory_space<vmem>>, %arg7: memref<32x32xbf16, #tpu.memory_space<vmem>>, %arg8: memref<1x32xf32, #tpu.memory_space<vmem>>, %arg9: memref<4x32xf32, #tpu.memory_space<vmem>>, %arg10: memref<32x4xf32, #tpu.memory_space<vmem>>, %arg11: memref<1x32xf32, #tpu.memory_space<vmem>>, %arg12: memref<1x32xf32, #tpu.memory_space<vmem>>, %arg13: memref<4x1x32xf32, #tpu.memory_space<vmem>>) attributes {dimension_semantics = [#tpu.dimension_semantics<parallel>], iteration_bounds = array<i64: 2>, scalar_prefetch = 0 : i64, scratch_operands = 0 : i64, tpu.core_type = #tpu.core_type<tc>, window_params = [{transform_indices = @transform_0, window_bounds = array<i64: 4, 8, 32>}, {transform_indices = @transform_1, window_bounds = array<i64: 4, 1, 8>}, {pipeline_mode = #tpu.pipeline_mode<synchronous>, transform_indices = @transform_2, window_bounds = array<i64: 1, 32>}, {pipeline_mode = #tpu.pipeline_mode<synchronous>, transform_indices = @transform_3, window_bounds = array<i64: 1, 32>}, {pipeline_mode = #tpu.pipeline_mode<synchronous>, transform_indices = @transform_4, window_bounds = array<i64: 32, 4>}, {pipeline_mode = #tpu.pipeline_mode<synchronous>, transform_indices = @transform_5, window_bounds = array<i64: 1, 4>}, {pipeline_mode = #tpu.pipeline_mode<synchronous>, transform_indices = @transform_6, window_bounds = array<i64: 32, 32>}, {pipeline_mode = #tpu.pipeline_mode<synchronous>, transform_indices = @transform_7, window_bounds = array<i64: 1, 32>}, {pipeline_mode = #tpu.pipeline_mode<synchronous>, transform_indices = @transform_8, window_bounds = array<i64: 4, 32>}, {pipeline_mode = #tpu.pipeline_mode<synchronous>, transform_indices = @transform_9, window_bounds = array<i64: 32, 4>}, {pipeline_mode = #tpu.pipeline_mode<synchronous>, transform_indices = @transform_10, window_bounds = array<i64: 1, 32>}, {pipeline_mode = #tpu.pipeline_mode<synchronous>, transform_indices = @transform_11, window_bounds = array<i64: 1, 32>}, {transform_indices = @transform_12, window_bounds = array<i64: 4, 1, 32>}]} {
    %c0 = arith.constant 0 : index
    %c0_0 = arith.constant 0 : index
    %c0_1 = arith.constant 0 : index
    %0 = vector.load %arg1[%c0, %c0_0, %c0_1] : memref<4x8x32xbf16, #tpu.memory_space<vmem>>, vector<4x8x32xbf16>
    %1 = arith.extf %0 : vector<4x8x32xbf16> to vector<4x8x32xf32>
    %c0_2 = arith.constant 0 : index
    %c0_3 = arith.constant 0 : index
    %c0_4 = arith.constant 0 : index
    %2 = vector.load %arg2[%c0_2, %c0_3, %c0_4] : memref<4x1x8xi32, #tpu.memory_space<vmem>>, vector<4x1x8xi32>
    %3 = vector.shape_cast %2 : vector<4x1x8xi32> to vector<4x8xi32>
    %c0_i32 = arith.constant 0 : i32
    %4 = vector.broadcast %c0_i32 : i32 to vector<4x8xi32>
    %5 = arith.cmpi ne, %3, %4 : vector<4x8xi32>
    %cst = arith.constant -9.99999984E+17 : f32
    %cst_5 = arith.constant 0.000000e+00 : f32
    %6 = vector.broadcast %cst : f32 to vector<4x8xf32>
    %7 = vector.broadcast %cst_5 : f32 to vector<4x8xf32>
    %8 = arith.select %5, %6, %7 : vector<4x8xi1>, vector<4x8xf32>
    %c0_6 = arith.constant 0 : index
    %c0_7 = arith.constant 0 : index
    %9 = vector.load %arg3[%c0_6, %c0_7] : memref<1x32xf32, #tpu.memory_space<vmem>>, vector<1x32xf32>
    %c0_8 = arith.constant 0 : index
    %c0_9 = arith.constant 0 : index
    %10 = vector.load %arg4[%c0_8, %c0_9] : memref<1x32xf32, #tpu.memory_space<vmem>>, vector<1x32xf32>
    %cst_10 = arith.constant dense<0.000000e+00> : vector<4x8xf32>
    %11 = vector.multi_reduction <add>, %1, %cst_10 [2] : vector<4x8x32xf32> to vector<4x8xf32>
    %12 = vector.shape_cast %11 : vector<4x8xf32> to vector<4x8x1xf32>
    %cst_11 = arith.constant 3.200000e+01 : f32
    %13 = vector.broadcast %cst_11 : f32 to vector<4x8x1xf32>
    %14 = arith.divf %12, %13 : vector<4x8x1xf32>
    %15 = vector.broadcast %14 : vector<4x8x1xf32> to vector<4x8x32xf32>
    %16 = arith.subf %1, %15 : vector<4x8x32xf32>
    %17 = arith.mulf %16, %16 : vector<4x8x32xf32>
    %cst_12 = arith.constant dense<0.000000e+00> : vector<4x8xf32>
    %18 = vector.multi_reduction <add>, %17, %cst_12 [2] : vector<4x8x32xf32> to vector<4x8xf32>
    %19 = vector.shape_cast %18 : vector<4x8xf32> to vector<4x8x1xf32>
    %cst_13 = arith.constant 3.200000e+01 : f32
    %20 = vector.broadcast %cst_13 : f32 to vector<4x8x1xf32>
    %21 = arith.divf %19, %20 : vector<4x8x1xf32>
    %22 = vector.broadcast %14 : vector<4x8x1xf32> to vector<4x8x32xf32>
    %23 = arith.subf %1, %22 : vector<4x8x32xf32>
    %cst_14 = arith.constant 9.99999997E-7 : f32
    %24 = vector.broadcast %cst_14 : f32 to vector<4x8x1xf32>
    %25 = arith.addf %21, %24 : vector<4x8x1xf32>
    %26 = math.rsqrt %25 : vector<4x8x1xf32>
    %27 = vector.broadcast %26 : vector<4x8x1xf32> to vector<4x8x32xf32>
    %28 = arith.mulf %23, %27 : vector<4x8x32xf32>
    %29 = vector.shape_cast %9 : vector<1x32xf32> to vector<1x1x32xf32>
    %30 = vector.broadcast %29 : vector<1x1x32xf32> to vector<4x8x32xf32>
    %31 = arith.mulf %28, %30 : vector<4x8x32xf32>
    %32 = vector.shape_cast %10 : vector<1x32xf32> to vector<1x1x32xf32>
    %33 = vector.broadcast %32 : vector<1x1x32xf32> to vector<4x8x32xf32>
    %34 = arith.addf %31, %33 : vector<4x8x32xf32>
    %35 = vector.shape_cast %34 : vector<4x8x32xf32> to vector<32x32xf32>
    %36 = arith.truncf %35 : vector<32x32xf32> to vector<32x32xbf16>
    %c0_15 = arith.constant 0 : index
    %c0_16 = arith.constant 0 : index
    %37 = vector.load %arg5[%c0_15, %c0_16] : memref<32x4xbf16, #tpu.memory_space<vmem>>, vector<32x4xbf16>
    %cst_17 = arith.constant dense<0.000000e+00> : vector<32x4xf32>
    %38 = tpu.matmul %36, %37, %cst_17 {dimension_numbers = #tpu.dot_dimension_numbers<[1], [0], [0], [1], [0, 0, 1, 1], [], []>} : vector<32x32xbf16>, vector<32x4xbf16>, vector<32x4xf32> -> vector<32x4xf32>
    %c0_18 = arith.constant 0 : index
    %c0_19 = arith.constant 0 : index
    %39 = vector.load %arg6[%c0_18, %c0_19] : memref<1x4xf32, #tpu.memory_space<vmem>>, vector<1x4xf32>
    %40 = vector.broadcast %39 : vector<1x4xf32> to vector<32x4xf32>
    %41 = arith.addf %38, %40 : vector<32x4xf32>
    %c0_20 = arith.constant 0 : index
    %c0_21 = arith.constant 0 : index
    %42 = vector.load %arg7[%c0_20, %c0_21] : memref<32x32xbf16, #tpu.memory_space<vmem>>, vector<32x32xbf16>
    %cst_22 = arith.constant dense<0.000000e+00> : vector<32x32xf32>
    %43 = tpu.matmul %36, %42, %cst_22 {dimension_numbers = #tpu.dot_dimension_numbers<[1], [0], [0], [1], [0, 0, 1, 1], [], []>} : vector<32x32xbf16>, vector<32x32xbf16>, vector<32x32xf32> -> vector<32x32xf32>
    %c0_23 = arith.constant 0 : index
    %c0_24 = arith.constant 0 : index
    %44 = vector.load %arg8[%c0_23, %c0_24] : memref<1x32xf32, #tpu.memory_space<vmem>>, vector<1x32xf32>
    %45 = vector.broadcast %44 : vector<1x32xf32> to vector<32x32xf32>
    %46 = arith.addf %43, %45 : vector<32x32xf32>
    %47 = vector.shape_cast %41 : vector<32x4xf32> to vector<4x8x4xf32>
    %48 = vector.shape_cast %8 : vector<4x8xf32> to vector<4x8x1xf32>
    %49 = vector.broadcast %48 : vector<4x8x1xf32> to vector<4x8x4xf32>
    %50 = arith.addf %47, %49 : vector<4x8x4xf32>
    %cst_25 = arith.constant dense<0xFF800000> : vector<4x4xf32>
    %51 = vector.multi_reduction <maximumf>, %50, %cst_25 [1] : vector<4x8x4xf32> to vector<4x4xf32>
    %52 = vector.shape_cast %51 : vector<4x4xf32> to vector<4x1x4xf32>
    %53 = vector.broadcast %52 : vector<4x1x4xf32> to vector<4x8x4xf32>
    %54 = arith.subf %50, %53 : vector<4x8x4xf32>
    %55 = math.exp %54 : vector<4x8x4xf32>
    %cst_26 = arith.constant dense<0.000000e+00> : vector<4x4xf32>
    %56 = vector.multi_reduction <add>, %55, %cst_26 [1] : vector<4x8x4xf32> to vector<4x4xf32>
    %57 = vector.shape_cast %56 : vector<4x4xf32> to vector<4x1x4xf32>
    %58 = tpu.reciprocal %57 {approx = true} : vector<4x1x4xf32> -> vector<4x1x4xf32>
    %59 = vector.broadcast %58 : vector<4x1x4xf32> to vector<4x8x4xf32>
    %60 = arith.mulf %55, %59 : vector<4x8x4xf32>
    %61 = vector.shape_cast %60 : vector<4x8x4xf32> to vector<32x4xf32>
    %c0_27 = arith.constant 0 : index
    %c0_28 = arith.constant 0 : index
    %62 = vector.load %arg9[%c0_27, %c0_28] : memref<4x32xf32, #tpu.memory_space<vmem>>, vector<4x32xf32>
    %cst_29 = arith.constant dense<0.000000e+00> : vector<32x32xf32>
    %63 = tpu.matmul %61, %62, %cst_29 {dimension_numbers = #tpu.dot_dimension_numbers<[1], [0], [0], [1], [0, 0, 1, 1], [], []>} : vector<32x4xf32>, vector<4x32xf32>, vector<32x32xf32> -> vector<32x32xf32>
    %64 = arith.mulf %63, %46 : vector<32x32xf32>
    %65 = vector.shape_cast %64 : vector<32x32xf32> to vector<4x8x32xf32>
    %cst_30 = arith.constant dense<0.000000e+00> : vector<4x32xf32>
    %66 = vector.multi_reduction <add>, %65, %cst_30 [1] : vector<4x8x32xf32> to vector<4x32xf32>
    %c0_31 = arith.constant 0 : index
    %c0_32 = arith.constant 0 : index
    %67 = vector.load %arg10[%c0_31, %c0_32] : memref<32x4xf32, #tpu.memory_space<vmem>>, vector<32x4xf32>
    %cst_33 = arith.constant dense<0.000000e+00> : vector<4x4xf32>
    %68 = tpu.matmul %66, %67, %cst_33 {dimension_numbers = #tpu.dot_dimension_numbers<[1], [0], [0], [1], [0, 0, 1, 1], [], []>} : vector<4x32xf32>, vector<32x4xf32>, vector<4x4xf32> -> vector<4x4xf32>
    %cst_34 = arith.constant 1.250000e-01 : f32
    %69 = vector.broadcast %cst_34 : f32 to vector<4x4xf32>
    %70 = arith.mulf %68, %69 : vector<4x4xf32>
    %c0_35 = arith.constant 0 : index
    %c0_36 = arith.constant 0 : index
    %71 = vector.load %arg9[%c0_35, %c0_36] : memref<4x32xf32, #tpu.memory_space<vmem>>, vector<4x32xf32>
    %cst_37 = arith.constant dense<0.000000e+00> : vector<4x32xf32>
    %72 = tpu.matmul %70, %71, %cst_37 {dimension_numbers = #tpu.dot_dimension_numbers<[1], [0], [0], [1], [0, 0, 1, 1], [], []>} : vector<4x4xf32>, vector<4x32xf32>, vector<4x32xf32> -> vector<4x32xf32>
    %73 = arith.subf %66, %72 : vector<4x32xf32>
    %74 = arith.mulf %73, %73 : vector<4x32xf32>
    %c0_38 = arith.constant 0 : index
    %c0_39 = arith.constant 0 : index
    %75 = vector.load %arg10[%c0_38, %c0_39] : memref<32x4xf32, #tpu.memory_space<vmem>>, vector<32x4xf32>
    %cst_40 = arith.constant dense<0.000000e+00> : vector<4x4xf32>
    %76 = tpu.matmul %74, %75, %cst_40 {dimension_numbers = #tpu.dot_dimension_numbers<[1], [0], [0], [1], [0, 0, 1, 1], [], []>} : vector<4x32xf32>, vector<32x4xf32>, vector<4x4xf32> -> vector<4x4xf32>
    %cst_41 = arith.constant 1.250000e-01 : f32
    %77 = vector.broadcast %cst_41 : f32 to vector<4x4xf32>
    %78 = arith.mulf %76, %77 : vector<4x4xf32>
    %cst_42 = arith.constant 9.99999997E-7 : f32
    %79 = vector.broadcast %cst_42 : f32 to vector<4x4xf32>
    %80 = arith.addf %78, %79 : vector<4x4xf32>
    %81 = math.rsqrt %80 : vector<4x4xf32>
    %c0_43 = arith.constant 0 : index
    %c0_44 = arith.constant 0 : index
    %82 = vector.load %arg9[%c0_43, %c0_44] : memref<4x32xf32, #tpu.memory_space<vmem>>, vector<4x32xf32>
    %cst_45 = arith.constant dense<0.000000e+00> : vector<4x32xf32>
    %83 = tpu.matmul %81, %82, %cst_45 {dimension_numbers = #tpu.dot_dimension_numbers<[1], [0], [0], [1], [0, 0, 1, 1], [], []>} : vector<4x4xf32>, vector<4x32xf32>, vector<4x32xf32> -> vector<4x32xf32>
    %84 = arith.mulf %73, %83 : vector<4x32xf32>
    %c0_46 = arith.constant 0 : index
    %c0_47 = arith.constant 0 : index
    %85 = vector.load %arg11[%c0_46, %c0_47] : memref<1x32xf32, #tpu.memory_space<vmem>>, vector<1x32xf32>
    %86 = vector.broadcast %85 : vector<1x32xf32> to vector<4x32xf32>
    %87 = arith.mulf %84, %86 : vector<4x32xf32>
    %c0_48 = arith.constant 0 : index
    %c0_49 = arith.constant 0 : index
    %88 = vector.load %arg12[%c0_48, %c0_49] : memref<1x32xf32, #tpu.memory_space<vmem>>, vector<1x32xf32>
    %89 = vector.broadcast %88 : vector<1x32xf32> to vector<4x32xf32>
    %90 = arith.addf %87, %89 : vector<4x32xf32>
    %91 = vector.shape_cast %90 : vector<4x32xf32> to vector<4x1x32xf32>
    %c0_50 = arith.constant 0 : index
    %c0_51 = arith.constant 0 : index
    %c0_52 = arith.constant 0 : index
    %92 = vector.load %arg13[%c0_50, %c0_51, %c0_52] : memref<4x1x32xf32, #tpu.memory_space<vmem>>, vector<4x1x32xf32>
    tpu.vector_store %arg13[%c0_50, %c0_51, %c0_52], %91 {strides = array<i32>} : memref<4x1x32xf32, #tpu.memory_space<vmem>>, vector<4x1x32xf32>,
    return
  }
  func.func @transform_0(%arg0: i32) -> (i32, i32, i32) {
    %c0_i32 = arith.constant 0 : i32
    %c0_i32_0 = arith.constant 0 : i32
    %c0_i32_1 = arith.constant 0 : i32
    return %arg0, %c0_i32, %c0_i32_0 : i32, i32, i32
  }
  func.func @transform_1(%arg0: i32) -> (i32, i32, i32) {
    %c0_i32 = arith.constant 0 : i32
    %c0_i32_0 = arith.constant 0 : i32
    %c0_i32_1 = arith.constant 0 : i32
    return %arg0, %c0_i32, %c0_i32_0 : i32, i32, i32
  }
  func.func @transform_2(%arg0: i32) -> (i32, i32) {
    %c0_i32 = arith.constant 0 : i32
    %c0_i32_0 = arith.constant 0 : i32
    %c0_i32_1 = arith.constant 0 : i32
    return %c0_i32, %c0_i32_0 : i32, i32
  }
  func.func @transform_3(%arg0: i32) -> (i32, i32) {
    %c0_i32 = arith.constant 0 : i32
    %c0_i32_0 = arith.constant 0 : i32
    %c0_i32_1 = arith.constant 0 : i32
    return %c0_i32, %c0_i32_0 : i32, i32
  }
  func.func @transform_4(%arg0: i32) -> (i32, i32) {
    %c0_i32 = arith.constant 0 : i32
    %c0_i32_0 = arith.constant 0 : i32
    %c0_i32_1 = arith.constant 0 : i32
    return %c0_i32, %c0_i32_0 : i32, i32
  }
  func.func @transform_5(%arg0: i32) -> (i32, i32) {
    %c0_i32 = arith.constant 0 : i32
    %c0_i32_0 = arith.constant 0 : i32
    %c0_i32_1 = arith.constant 0 : i32
    return %c0_i32, %c0_i32_0 : i32, i32
  }
  func.func @transform_6(%arg0: i32) -> (i32, i32) {
    %c0_i32 = arith.constant 0 : i32
    %c0_i32_0 = arith.constant 0 : i32
    %c0_i32_1 = arith.constant 0 : i32
    return %c0_i32, %c0_i32_0 : i32, i32
  }
  func.func @transform_7(%arg0: i32) -> (i32, i32) {
    %c0_i32 = arith.constant 0 : i32
    %c0_i32_0 = arith.constant 0 : i32
    %c0_i32_1 = arith.constant 0 : i32
    return %c0_i32, %c0_i32_0 : i32, i32
  }
  func.func @transform_8(%arg0: i32) -> (i32, i32) {
    %c0_i32 = arith.constant 0 : i32
    %c0_i32_0 = arith.constant 0 : i32
    %c0_i32_1 = arith.constant 0 : i32
    return %c0_i32, %c0_i32_0 : i32, i32
  }
  func.func @transform_9(%arg0: i32) -> (i32, i32) {
    %c0_i32 = arith.constant 0 : i32
    %c0_i32_0 = arith.constant 0 : i32
    %c0_i32_1 = arith.constant 0 : i32
    return %c0_i32, %c0_i32_0 : i32, i32
  }
  func.func @transform_10(%arg0: i32) -> (i32, i32) {
    %c0_i32 = arith.constant 0 : i32
    %c0_i32_0 = arith.constant 0 : i32
    %c0_i32_1 = arith.constant 0 : i32
    return %c0_i32, %c0_i32_0 : i32, i32
  }
  func.func @transform_11(%arg0: i32) -> (i32, i32) {
    %c0_i32 = arith.constant 0 : i32
    %c0_i32_0 = arith.constant 0 : i32
    %c0_i32_1 = arith.constant 0 : i32
    return %c0_i32, %c0_i32_0 : i32, i32
  }
  func.func @transform_12(%arg0: i32) -> (i32, i32, i32) {
    %c0_i32 = arith.constant 0 : i32
    %c0_i32_0 = arith.constant 0 : i32
    %c0_i32_1 = arith.constant 0 : i32
    return %arg0, %c0_i32, %c0_i32_0 : i32, i32, i32
  }
}

</mosaic_0001>

<bundles_post_ra>
// kernel: tpu_custom_call.1
= control target key start
LH: loop header
LB: loop body
LE: loop exit
PB: predicated region body
PF: predicated region fallthrough
CT: control target
= control target key end

     0   :  { %s1896_s0 = inlined_call_operand.vmem [shape: bf16[8,8,32], index: 0, kind: input, shape index: {}]   ;;  %s1897_s1 = inlined_call_operand.hbm [shape: s32[8,1,8], index: 1, kind: input, shape index: {}]   ;;  %s1898_s2 = inlined_call_operand.vmem [shape: f32[1,32], index: 2, kind: input, shape index: {}]   ;;  %s1899_s3 = inlined_call_operand.vmem [shape: f32[1,32], index: 3, kind: input, shape index: {}]   ;;  %s1900_s4 = inlined_call_operand.vmem [shape: bf16[32,4], index: 4, kind: input, shape index: {}]   ;;  %s1901_s5 = inlined_call_operand.hbm [shape: f32[1,4], index: 5, kind: input, shape index: {}]   ;;  %s1902_s6 = inlined_call_operand.vmem [shape: bf16[32,32], index: 6, kind: input, shape index: {}]   ;;  %s1903_s7 = inlined_call_operand.hbm [shape: f32[1,32], index: 7, kind: input, shape index: {}]   ;;  %s1904_s8 = inlined_call_operand.vmem [shape: f32[4,32], index: 8, kind: input, shape index: {}]   ;;  %s1905_s9 = inlined_call_operand.vmem [shape: f32[32,4], index: 9, kind: input, shape index: {}]   ;;  %s1906_s10 = inlined_call_operand.vmem [shape: f32[1,32], index: 10, kind: input, shape index: {}]   ;;  %s1907_s11 = inlined_call_operand.vmem [shape: f32[1,32], index: 11, kind: input, shape index: {}]   ;;  %s1908_s12 = inlined_call_operand.hbm [shape: f32[8,1,32], index: 12, kind: output, shape index: {}]  }
   0x1   :  { %1916 = sst [smem:[#allocation17_spill]] %s1901_s5 }
   0x2   :  { %1917 = sst [smem:[#allocation18_spill]] %s1903_s7 }
   0x3   :  { %1918 = sst [smem:[#allocation19_spill]] %s1907_s11 }
   0x4   :  { %1919 = sst [smem:[#allocation20_spill]] %s1908_s12 }
   0x5   :  { %17 = vsyncpa [#allocation3], 0 }
   0x6   :  { %19 = vsyncpa [#allocation3 + $0x1], 0 }
   0x7   :  { %20 = vsyncpa [#allocation6], 0 }
   0x8   :  { %21 = vsyncpa [#allocation4], 0 }
   0x9   :  { %23 = vsyncpa [#allocation4 + $0x1], 0  ;;  %s1594_s21 = smov 0   ;;  %s1596_s22 = smov 0  }
   0xa   :  { %s1598_s23 = smov 0   ;;  %s1600_s24 = smov 0  }
   0xb LB: > { %1920 = sst [smem:[#allocation12_spill]] %s1507_s21  ;;  %s1615_s25 = sadd.s32 4294967295, %s1519_s24   ;;  %s1519_s24 = sphi %s1600_s24, %s1941_s24   ;;  %s1515_s23 = sphi %s1598_s23, %s1945_s23   ;;  %s1511_s22 = sphi %s1596_s22, %s1944_s22   ;;  %s1507_s21 = sphi %s1594_s21, %s1943_s21  }
   0xc   : > { %s1187_s26 = sadd.s32 4294967294, %s1519_s24   ;;  %s1619_s27 = sadd.s32 1, %s1519_s24  }
   0xd   : > { %1921 = sst [smem:[#allocation13_spill]] %s1619_s27  ;;  %s62_s28 = sadd.s32 1, %s1515_s23 }
   0xe   : > { %s59_s29 = ssub.s32 %s1519_s24, %s1619_s27  ;;  %p69_p0 = scmp.ne.s32.totalorder %s1515_s23, %s1511_s22 }
   0xf   : > { %p60_p1 = scmp.eq.s32.totalorder %s59_s29, 0  ;;  %p70_p2 = scmp.eq.s32.totalorder %s1519_s24, 0 }
  0x10   : > { %p75_p3 = scmp.ne.s32.totalorder %s1511_s22, %s1507_s21  ;;  %p76_p4 = scmp.eq.s32.totalorder %s1615_s25, 0 }
  0x11   : > { %s1631_s30 = scalar_select %p60_p1, %s1515_s23, %s62_s28  }
  0x12   : > { %p1633_p5 = por %p70_p2, %p69_p0  ;;  %p1639_p6 = por %p76_p4, %p75_p3 }
  0x13   : > { %1922 = sst [smem:[#allocation14_spill]] %s1631_s30  ;;  %p309_p7 = scmp.eq.s32.totalorder %s1615_s25, 1 }
  0x14   : > { %p315_p8 = scmp.eq.s32.totalorder %s1187_s26, 1  ;;  %p1188_p9 = scmp.ge.s32.totalorder %s1519_s24, 1 }
  0x15   : > { %p322_p10 = scmp.lt.s32.totalorder %s1519_s24, 3  ;;  %p1646_p11 = por %p309_p7, %p69_p0 }
  0x16   : > { %p1650_p12 = por %p315_p8, %p75_p3  ;;  %s1930_s5 = sld [smem:[#allocation17_spill]] }
  0x17   : > { %s1925_s15 = scalar_select %p1646_p11, 1, 0 }
  0x18   : > { %s1927_s16 = scalar_select %p1650_p12, 1, 0 }
  0x19   : > { %1926 = sst [smem:[#allocation15_spill]] %s1925_s15  ;;  %p1654_p13 = pnand %p1188_p9, %p322_p10 }
  0x1a   : > { %1928 = sst [smem:[#allocation16_spill]] %s1927_s16  ;;  %s1521_s26 = smov [#allocation5]  }
  0x1b   : > { %p1261_p1 = pneg %p1654_p13  ;;  %s345_s28 = sshll.u32 %s1521_s26, 4  ;;  %s346_s28 = int_to_ptr.vmem [resolvable:$true] %s345_s28 }
  0x1c   : > { %s343_s20 = sshll.u32 %s1930_s5, 4  ;;  %p1278_p3 = scmp.lt.s32.totalorder %s1519_s24, 2  ;;  %s344_s20 = int_to_ptr.hbm [resolvable:$true] %s343_s20 }
  0x1d   : > { %p1262_p2 = pnand %p1261_p1, %p76_p4  ;;  %s1931_s7 = sld [smem:[#allocation18_spill]] }
  0x1e   : > { %p1672_p7 = pnand %p1278_p3, %p1633_p5  ;;  %s1522_s19 = smov [#allocation7]  }
  0x1f   : > { %1264 = dma.hbm_to_vmem [thread:$0]  (!%p1262_p2), %s344_s20, 16, %s346_s28, [#allocation6]  }
  0x20   : > { %s360_s5 = sshll.u32 %s1522_s19, 4  ;;  %s392_s16 = sand.u32 1, %s1515_s23   ;;  %s361_s5 = int_to_ptr.vmem [resolvable:$true] %s360_s5 }
  0x21   : > { %s1192_s26 = sshll.u32 %s392_s16, 2  ;;  %s1193_s21 = sshll.u32 %s1519_s24, 2 }
  0x22   : > { %s400_s30 = scalar_lea.hbm %s1897_s1, %s1193_s21  ;;  %s396_s29 = scalar_lea.vmem [#allocation2], %s1192_s26 }
  0x23   : > { %s358_s27 = sshll.u32 %s1931_s7, 4  ;;  %s403_s7 = sshll.u32 %s396_s29, 4  ;;  %s359_s27 = int_to_ptr.hbm [resolvable:$true] %s358_s27  ;;  %s404_s7 = int_to_ptr.vmem [resolvable:$true] %s403_s7 }
  0x24   : > { %1267 = dma.hbm_to_vmem [thread:$0]  (!%p1262_p2), %s359_s27, 16, %s361_s5, [#allocation6]  }
  0x25   : > { %s401_s20 = sshll.u32 %s400_s30, 4  ;;  %s393_s13 = scalar_lea.sflag [#allocation3], %s392_s16  ;;  %s402_s20 = int_to_ptr.hbm [resolvable:$true] %s401_s20 }
  0x26   : > { %s1419_s28 = sshra.s32 %s402_s20, 4  ;;  %p1423_p8 = pneg %p1672_p7  ;;  %s1420_s28 = int_to_ptr.hbm [resolvable:$true] %s1419_s28 }
  0x27   : > { %s1421_s12 = scalar_lea.hbm %s1420_s28, 4  ;;  %s1426_s19 = scalar_lea.hbm %s1897_s1, 8 }
  0x28   : > { %p1422_p5 = scmp.ne.s32.totalorder %s1420_s28, %s1421_s12  ;;  %p1427_p1 = scmp.lt.s32.totalorder %s1420_s28, %s1897_s1 }
  0x29   : > { %p1428_p2 = scmp.lt.s32.totalorder %s1426_s19, %s1421_s12 }
  0x2a   : > { %p1424_p9 = pnand %p1423_p8, %p1422_p5 }
  0x2b   : > { %p1429_p3 = por %p1428_p2, %p1427_p1 }
  0x2c   : > { %p1425_p10 = pneg %p1424_p9 }
  0x2e   : > { %p1430_p0 = pnand %p1429_p3, %p1425_p10 }
  0x30   : > { %1433 = shalt.err (!%p1430_p0)
}
  0x31   : > { %s1523_s15 = smov 16   ;;  %s1524_s16 = smov 1  }
  0x32   : > { %1271 = dma.hbm_to_vmem [thread:$0]  (!%p1672_p7), %s402_s20, 64, %s404_s7, %s393_s13, %s1523_s15, %s1523_s15, %s1524_s16  }
  0x33   : > { %415 = sbr.rel (%p1654_p13) target bundleno = 1273 (0x4f9), region = 68  ;;  %s1694_s26 = sand.u32 (!%p1654_p13), 1, %s1511_s22  }
  0x34   : > { %s1195_s30 = sshll.u32 (!%p1654_p13), %s1694_s26, 2  ;;  %s418_s12 = scalar_lea.sflag (!%p1654_p13), [#allocation3], %s1694_s26 }
  0x35   : > { %s1700_s29 = scalar_lea.vmem (!%p1654_p13), [#allocation2], %s1195_s30 }
  0x38   : > { %1494 = dma.done.wait (%p1639_p6), %s418_s12, 64  }
  0x39   : > { %1496 = vsyncadd (%p1639_p6), %s418_s12, 4294967232 }
  0x3a   : > { %1498 = dma.done.wait (%p76_p4), [#allocation6], 32  }
  0x3b   : > { %1500 = vsyncadd (%p76_p4), [#allocation6], 4294967264  ;;  %s1711_s7 = sshll.u32 %s1615_s25, 2  ;;  %vm509_vm0 = vcmask 261120   ;;  %v1525_v10 = vmov 32.0   ;;  %v1237_v37 = vld [vmem:[%s1900_s4 + $0x8] sm:$0xff]  ;;  %v706_v49 = vlaneseq }
  0x3c   : > { %p479_p13 = scmp.lt.s32.totalorder %s1711_s7, 7  ;;  %1331 = vrcp.f32 %v1525_v10  ;;  %v1239_v38 = vld [vmem:[%s1902_s6 + $0x8] sm:$0xff]  ;;  %653 = vmatpush.bf16.msra.mxu0 %v1237_v37  ;;  %v1236_v42 = vld [vmem:[%s1900_s4] sm:$0xff]  ;;  %s1936_s13 = sld [smem:[#allocation19_spill]] }
  0x3d   : > { %692 = vmatpush.bf16.msra.mxu1 %v1239_v38  ;;  %v1238_v43 = vld [vmem:[%s1902_s6] sm:$0xff]  ;;  %v707_v52 = vshrl.u32 %v706_v49, 7  ;;  %s1069_s5 = scalar_lea.sflag [#allocation4], %s1694_s26 }
  0x3e   : > { %s480_s17 = scalar_select %p479_p13, %s1711_s7, 7 }
  0x3f   : > { %1323 = vset.pattern.permute.xlu0 %v707_v52  ;;  %1324 = vset.pattern.permute.xlu1 %v707_v52 }
  0x40   : > { %s1200_s18 = sshll.u32 %s480_s17, 2  ;;  %654 = vmatpush.bf16.msra.mxu0 %v1236_v42  ;;  %1322 = vset.pattern.permute.xlu2 %v707_v52  ;;  %s1935_s17 = sld [smem:[#allocation20_spill]] }
  0x41   : > { %s482_s28 = scalar_lea.vmem %s1896_s0, %s1200_s18  ;;  %693 = vmatpush.bf16.msra.mxu1 %v1238_v43 }
  0x42   : > { %v1248_v0 = vld [vmem:[%s482_s28 + $0x8] sm:$0xff]   ;;  %v1241_v1 = vld [vmem:[%s482_s28] sm:$0xff]   ;;  %v1332_v11 = vpop.eup %1331 }
  0x43   : > { %v1246_v2 = vunpack.c.l.bf16 %v1248_v0  ;;  %v1242_v3 = vunpack.c.l.bf16 %v1241_v1  ;;  %v1247_v6 = vunpack.c.h.bf16 %v1248_v0  ;;  %v1243_v7 = vunpack.c.h.bf16 %v1241_v1 }
  0x44   : > { %v523_v12 = vmul.f32 32.0, %v1332_v11  ;;  %vm527_vm1 = vweird.f32 %v1332_v11 }
  0x45   : > { %v516_v4 = vsel %vm509_vm0, %v1246_v2, 0.0  ;;  %v510_v5 = vsel %vm509_vm0, %v1242_v3, 0.0  ;;  %v519_v8 = vsel %vm509_vm0, %v1247_v6, 0.0  ;;  %v513_v9 = vsel %vm509_vm0, %v1243_v7, 0.0 }
  0x46   : > { %517 = vadd.xlane.f32.xlu1 %v516_v4  ;;  %511 = vadd.xlane.f32.xlu0 %v510_v5  ;;  %v524_v13 = vsub.f32 1.0, %v523_v12  ;;  %v1526_v12 = vmov 0.0   ;;  %s1079_s18 = scalar_lea.hbm %s1935_s17, %s1711_s7  ;;  %s477_s7 = scalar_lea.vmem [#allocation8], %s1195_s30 }
  0x47   : > { %s1862_s28 = sshll.u32 %s1079_s18, 4  ;;  %s1080_s14 = sshll.u32 %s477_s7, 4  ;;  %s1083_s28 = int_to_ptr.hbm [resolvable:$true] %s1862_s28  ;;  %s1081_s14 = int_to_ptr.vmem [resolvable:$true] %s1080_s14 }
  0x48   : > { %v525_v14 = vmul.f32 %v1332_v11, %v524_v13  ;;  %s1463_s27 = sshra.s32 %s1083_s28, 4  ;;  %s1469_s21 = scalar_lea.hbm %s1935_s17, 8  ;;  %s1464_s27 = int_to_ptr.hbm [resolvable:$true] %s1463_s27 }
  0x49   : > { %s1465_s19 = scalar_lea.hbm %s1464_s27, 4  ;;  %p1470_p7 = scmp.lt.s32.totalorder %s1464_s27, %s1935_s17 }
  0x4a   : > { %v526_v15 = vadd.f32 %v1332_v11, %v525_v14  ;;  %p1466_p4 = scmp.ne.s32.totalorder %s1464_s27, %s1465_s19  ;;  %p1471_p5 = scmp.lt.s32.totalorder %s1469_s21, %s1465_s19 }
  0x4c   : > { %v528_v16 = vsel %vm527_vm1, %v1332_v11, %v526_v15  ;;  %v495_v11 = vld [vmem:[%s1700_s29] sm:$0x1]  ;;  %p1467_p6 = pnand %p1466_p4, %p1646_p11  ;;  %p1472_p8 = por %p1471_p5, %p1470_p7 }
  0x4d   : > { %vm499_vm8 = vcmp.ne.s32.totalorder %v495_v11, 0 }
  0x4e   : > { %520 = vadd.xlane.f32.xlu1 %v519_v8  ;;  %514 = vadd.xlane.f32.xlu0 %v513_v9  ;;  %v497_v8 = vld [vmem:[%s1700_s29 + $0x2] sm:$0x1]  ;;  %p1468_p0 = pneg %p1467_p6 }
  0x4f   : > { %vm501_vm6 = vcmp.ne.s32.totalorder %v497_v8, 0 }
  0x50   : > { %v505_v14 = vsel %vm501_vm6, -1e+18, %v1526_v12  ;;  %vm902_vm6 = vcmask 1042434   ;;  %p1473_p9 = pnand %p1472_p8, %p1468_p0 }
  0xb9   : > { %v518_v17 = vpop.xlane.xlu1 %517  ;;  %v512_v18 = vpop.xlane.xlu0 %511 }
  0xba   : > { %v531_v19 = vmul.f32 %v528_v16, %v518_v17  ;;  %v529_v20 = vmul.f32 %v528_v16, %v512_v18  ;;  %v719_v18 = vperm.slane %v505_v14, 0 }
  0xbc   : > { %v1722_v21 = vsub.f32 %v1246_v2, %v531_v19  ;;  %v1724_v22 = vsub.f32 %v1242_v3, %v529_v20  ;;  %v1325_v20 = vld [vmem:[%s1898_s2] ss:$0 sm:$0xff] }
  0xbe   : > { %v539_v23 = vmul.f32 %v1722_v21, %v1722_v21  ;;  %v537_v24 = vmul.f32 %v1724_v22, %v1724_v22 }
  0xc0   : > { %v547_v25 = vsel %vm509_vm0, %v539_v23, 0.0  ;;  %v541_v26 = vsel %vm509_vm0, %v537_v24, 0.0  ;;  %v498_v23 = vld [vmem:[%s1700_s29 + $0x3] sm:$0x1] }
  0xc1   : > { %v521_v27 = vpop.xlane.xlu1 %520  ;;  %548 = vadd.xlane.f32.xlu0 %v547_v25  ;;  %542 = vadd.xlane.f32.xlu2 %v541_v26  ;;  %v515_v28 = vpop.xlane.xlu0 %514  ;;  %v503_v26 = vsel %vm499_vm8, -1e+18, %v1526_v12  ;;  %vm502_vm11 = vcmp.ne.s32.totalorder %v498_v23, 0 }
  0xc2   : > { %v532_v29 = vmul.f32 %v528_v16, %v521_v27  ;;  %v530_v30 = vmul.f32 %v528_v16, %v515_v28  ;;  %v705_v27 = vperm.slane %v503_v26, 0 }
  0xc4   : > { %v1732_v31 = vsub.f32 %v1247_v6, %v532_v29  ;;  %v1734_v32 = vsub.f32 %v1243_v7, %v530_v30  ;;  %v496_v7 = vld [vmem:[%s1700_s29 + $0x1] sm:$0x1] }
  0xc5   : > { %vm500_vm5 = vcmp.ne.s32.totalorder %v496_v7, 0  ;;  %v1808_v7 = vld [vmem:[%s1904_s8] sm:$0xf] }
  0xc6   : > { %v540_v33 = vmul.f32 %v1732_v31, %v1732_v31  ;;  %v538_v34 = vmul.f32 %v1734_v32, %v1734_v32  ;;  %v504_v13 = vsel %vm500_vm5, -1e+18, %v1526_v12  ;;  %vm900_vm5 = vcmask 1041409  }
  0xc7   : > { %v712_v17 = vperm.slane %v504_v13, 0 }
  0xc8   : > { %v550_v35 = vsel %vm509_vm0, %v540_v33, 0.0  ;;  %v544_v36 = vsel %vm509_vm0, %v538_v34, 0.0  ;;  %v1326_v33 = vld [vmem:[%s1899_s3] ss:$0 sm:$0xff] }
  0xc9   : > { %551 = vadd.xlane.f32.xlu1 %v550_v35  ;;  %545 = vadd.xlane.f32.xlu2 %v544_v36  ;;  %v506_v36 = vsel %vm502_vm11, -1e+18, %v1526_v12 }
  0xd5   : > { %717 = vperm.xlu0 %1323, %v712_v17  }
  0xe1   : > { %710 = vperm.xlu2 %1322, %v705_v27  }
  0xe2   : > { %724 = vperm.xlu1 %1324, %v719_v18  }
 0x134   : > { %v543_v39 = vpop.xlane.xlu2 %542  ;;  %v549_v40 = vpop.xlane.xlu0 %548 }
 0x135   : > { %v553_v41 = vmul.f32 %v543_v39, %v528_v16  ;;  %v555_v45 = vmul.f32 %v549_v40, %v528_v16  ;;  %v726_v40 = vperm.slane %v506_v36, 0 }
 0x137   : > { %v557_v44 = vadd.f32 1e-06, %v553_v41  ;;  %v1754_v46 = vadd.f32 1e-06, %v555_v45  ;;  %731 = vperm.xlu2 %1322, %v726_v40  }
 0x139   : > { %1333 = vrsqrt.f32 %v557_v44  ;;  %vm567_vm3 = vweird.f32 %v557_v44  ;;  %vm587_vm14 = vweird.f32 %v1754_v46 }
 0x13a   : > { %1335 = vrsqrt.f32 %v1754_v46 }
 0x13c   : > { %v552_v47 = vpop.xlane.xlu1 %551  ;;  %v546_v48 = vpop.xlane.xlu2 %545 }
 0x13d   : > { %v556_v50 = vmul.f32 %v552_v47, %v528_v16  ;;  %v554_v51 = vmul.f32 %v546_v48, %v528_v16 }
 0x13f   : > { %v1334_v53 = vpop.eup %1333  ;;  %v1757_v54 = vadd.f32 1e-06, %v556_v50  ;;  %v558_v55 = vadd.f32 1e-06, %v554_v51  ;;  %v1327_v51 = vld [vmem:[#allocation5] ss:$0 sm:$0xff] }
 0x140   : > { %v562_v56 = vmul.f32 %v1334_v53, %v557_v44  ;;  %v1760_v59 = vpop.eup %1335  ;;  %vm568_vm2 = vweird.f32 %v1334_v53 }
 0x141   : > { %1337 = vrsqrt.f32 %v1757_v54  ;;  %v582_v63 = vmul.f32 %v1760_v59, %v1754_v46  ;;  %vm1769_vm4 = vmor %vm567_vm3, %vm568_vm2  ;;  %vm577_vm9 = vweird.f32 %v558_v55  ;;  %vm597_vm12 = vweird.f32 %v1757_v54 }
 0x142   : > { %v563_v57 = vmul.f32 %v1334_v53, %v562_v56  ;;  %1339 = vrsqrt.f32 %v558_v55  ;;  %vm588_vm15 = vweird.f32 %v1760_v59  ;;  %vm737_vm3 = vcmask 31744  }
 0x143   : > { %v583_v6 = vmul.f32 %v1760_v59, %v582_v63  ;;  %vm589_vm2 = vmor %vm587_vm14, %vm588_vm15 }
 0x144   : > { %v564_v58 = vmul.f32 0.5, %v563_v57 }
 0x145   : > { %v584_v24 = vmul.f32 0.5, %v583_v6 }
 0x146   : > { %v565_v60 = vsub.f32 1.5, %v564_v58 }
 0x147   : > { %v1762_v61 = vpop.eup %1337  ;;  %v585_v34 = vsub.f32 1.5, %v584_v24  ;;  %v718_v58 = vpop.permute.xlu0 %717 }
 0x148   : > { %v1340_v62 = vpop.eup %1339  ;;  %v592_v0 = vmul.f32 %v1762_v61, %v1757_v54  ;;  %v566_v1 = vmul.f32 %v1334_v53, %v565_v60  ;;  %vm598_vm13 = vweird.f32 %v1762_v61  ;;  %v711_v54 = vpop.permute.xlu2 %710 }
 0x149   : > { %v572_v2 = vmul.f32 %v1340_v62, %v558_v55  ;;  %vm578_vm7 = vweird.f32 %v1340_v62  ;;  %vm599_vm1 = vmor %vm597_vm12, %vm598_vm13  ;;  %v586_v39 = vmul.f32 %v1760_v59, %v585_v34 }
 0x14a   : > { %v593_v3 = vmul.f32 %v1762_v61, %v592_v0  ;;  %v570_v9 = vsel %vm1769_vm4, %v1334_v53, %v566_v1  ;;  %vm579_vm10 = vmor %vm577_vm9, %vm578_vm7  ;;  %vm827_vm4 = vcmask 1043456   ;;  %vm904_vm7 = vcmask 1043459  }
 0x14b   : > { %v573_v4 = vmul.f32 %v1340_v62, %v572_v2  ;;  %v601_v19 = vmul.f32 %v570_v9, %v1724_v22  ;;  %v590_v43 = vsel %vm589_vm2, %v1760_v59, %v586_v39  ;;  %1221 = vmatpush.msk.msra.mxu2 %vm827_vm4, %v1808_v7 }
 0x14c   : > { %v594_v15 = vmul.f32 0.5, %v593_v3  ;;  %v603_v45 = vmul.f32 %v590_v43, %v1722_v21 }
 0x14d   : > { %v574_v10 = vmul.f32 0.5, %v573_v4  ;;  %v608_v30 = vmul.f32 %v1325_v20, %v601_v19 }
 0x14e   : > { %v595_v28 = vsub.f32 1.5, %v594_v15  ;;  %v610_v47 = vmul.f32 %v1325_v20, %v603_v45 }
 0x14f   : > { %v575_v16 = vsub.f32 1.5, %v574_v10 }
 0x150   : > { %v596_v37 = vmul.f32 %v1762_v61, %v595_v28  ;;  %v617_v49 = vadd.f32 %v1326_v33, %v610_v47 }
 0x151   : > { %v576_v25 = vmul.f32 %v1340_v62, %v575_v16 }
 0x152   : > { %v600_v42 = vsel %vm599_vm1, %v1762_v61, %v596_v37 }
 0x153   : > { %v580_v29 = vsel %vm579_vm10, %v1340_v62, %v576_v25  ;;  %v604_v44 = vmul.f32 %v600_v42, %v1732_v31 }
 0x154   : > { %v602_v22 = vmul.f32 %v580_v29, %v1734_v32  ;;  %v615_v32 = vadd.f32 %v1326_v33, %v608_v30  ;;  %v725_v5 = vpop.permute.xlu1 %724 }
 0x155   : > { %v611_v46 = vmul.f32 %v1325_v20, %v604_v44 }
 0x156   : > { %v609_v35 = vmul.f32 %v1325_v20, %v602_v22 }
 0x157   : > { %v618_v48 = vadd.f32 %v1326_v33, %v611_v46 }
 0x158   : > { %v616_v38 = vadd.f32 %v1326_v33, %v609_v35 }
 0x159   : > { %v620_v50 = vpack.c.bf16 %v618_v48, %v617_v49 }
 0x15a   : > { %v619_v41 = vpack.c.bf16 %v616_v38, %v615_v32 }
 0x15c   : > { %1209 = vmatmul.msk.bf16.vlgmr.msra.gmra.mxu0 %vm509_vm0, %v619_v41  ;;  %1219 = vmatmul.msk.bf16.vlgmr.msra.gmra.mxu1 %vm509_vm0, %v619_v41 }
 0x16c   : > { %1210 = vmatmul.msk.bf16.gmra.mxu0 %vm509_vm0, %v620_v50  ;;  %1220 = vmatmul.msk.bf16.gmra.mxu1 %vm509_vm0, %v620_v50 }
 0x191   : > { %v732_v20 = vpop.permute.xlu2 %731 }
 0x1d9   : > { %v656_v52 = vpop.f32.mrf.mxu0 }
 0x1da   : > { %v657_v53 = vadd.f32 %v1327_v51, %v656_v52 }
 0x1dc   : > { %v733_v55 = vadd.f32 %v711_v54, %v657_v53 }
 0x1de   : > { %v738_v56 = vsel %vm737_vm3, %v733_v55, -inf }
 0x1df   : > { %v739_v31 = vrot.slane %v738_v56, 4 }
 0x1e1   : > { %v740_v57 = vmax.f32 %v738_v56, %v739_v31  ;;  %v658_v21 = vpop.f32.mrf.mxu0 }
 0x1e2   : > { %v659_v59 = vadd.f32 %v1327_v51, %v658_v21 }
 0x1e3   : > { %v741_v60 = vrot.slane %v740_v57, 2 }
 0x1e4   : > { %v734_v61 = vadd.f32 %v718_v58, %v659_v59 }
 0x1e5   : > { %v742_v62 = vmax.f32 %v740_v57, %v741_v60 }
 0x1e6   : > { %v745_v63 = vsel %vm737_vm3, %v734_v61, -inf }
 0x1e7   : > { %v743_v0 = vrot.slane %v742_v62, 1  ;;  %v746_v1 = vrot.slane %v745_v63, 4 }
 0x1e9   : > { %v744_v2 = vmax.f32 %v742_v62, %v743_v0  ;;  %v747_v3 = vmax.f32 %v745_v63, %v746_v1  ;;  %v661_v4 = vpop.f32.mrf.mxu0 }
 0x1ea   : > { %v662_v6 = vadd.f32 %v1327_v51, %v661_v4 }
 0x1eb   : > { %v766_v8 = vsub.f32 %v733_v55, %v744_v2  ;;  %v748_v9 = vrot.slane %v747_v3, 2 }
 0x1ec   : > { %v735_v10 = vadd.f32 %v725_v5, %v662_v6 }
 0x1ed   : > { %v770_v11 = vmul.f32 1.442695, %v766_v8  ;;  %v749_v12 = vmax.f32 %v747_v3, %v748_v9 }
 0x1ee   : > { %v752_v13 = vsel %vm737_vm3, %v735_v10, -inf }
 0x1ef   : > { %1341 = vpow2.f32 %v770_v11  ;;  %v750_v14 = vrot.slane %v749_v12, 1  ;;  %v753_v15 = vrot.slane %v752_v13, 4 }
 0x1f1   : > { %v751_v16 = vmax.f32 %v749_v12, %v750_v14  ;;  %v754_v17 = vmax.f32 %v752_v13, %v753_v15  ;;  %v663_v18 = vpop.f32.mrf.mxu0 }
 0x1f2   : > { %v664_v19 = vadd.f32 %v1327_v51, %v663_v18 }
 0x1f3   : > { %v767_v23 = vsub.f32 %v734_v61, %v751_v16  ;;  %v755_v24 = vrot.slane %v754_v17, 2  ;;  %v695_v16 = vpop.f32.mrf.mxu1 }
 0x1f4   : > { %v736_v25 = vadd.f32 %v732_v20, %v664_v19  ;;  %v895_v19 = vld [vmem:[%s1905_s9 + $0x18] sm:$0xff]  ;;  %v1328_v20 = vld [vmem:[#allocation7] ss:$0 sm:$0xff] }
 0x1f5   : > { %v1342_v26 = vpop.eup %1341  ;;  %v772_v27 = vmul.f32 1.442695, %v767_v23  ;;  %v756_v28 = vmax.f32 %v754_v17, %v755_v24  ;;  %920 = vmatpush.msra.mxu3 %v895_v19  ;;  %v894_v23 = vld [vmem:[%s1905_s9 + $0x10] sm:$0xff]  ;;  %v893_v24 = vld [vmem:[%s1905_s9 + $0x8] sm:$0xff] }
 0x1f6   : > { %v778_v29 = vsel %vm737_vm3, %v1342_v26, 0.0  ;;  %v759_v22 = vsel %vm737_vm3, %v736_v25, -inf }
 0x1f7   : > { %v779_v30 = vrot.slane %v778_v29, 4  ;;  %1343 = vpow2.f32 %v772_v27  ;;  %v757_v33 = vrot.slane %v756_v28, 1  ;;  %v760_v34 = vrot.slane %v759_v22, 4  ;;  %921 = vmatpush.msra.mxu3 %v894_v23 }
 0x1f9   : > { %v780_v35 = vadd.f32 %v779_v30, %v778_v29  ;;  %v758_v36 = vmax.f32 %v756_v28, %v757_v33  ;;  %v761_v37 = vmax.f32 %v759_v22, %v760_v34  ;;  %922 = vmatpush.msra.mxu3 %v893_v24 }
 0x1fb   : > { %v768_v32 = vsub.f32 %v735_v10, %v758_v36  ;;  %v762_v38 = vrot.slane %v761_v37, 2  ;;  %v781_v39 = vrot.slane %v780_v35, 2  ;;  %v697_v17 = vpop.f32.mrf.mxu1 }
 0x1fc   : > { %v698_v27 = vadd.f32 %v1328_v20, %v697_v17 }
 0x1fd   : > { %v1344_v40 = vpop.eup %1343  ;;  %v774_v41 = vmul.f32 1.442695, %v768_v32  ;;  %v763_v42 = vmax.f32 %v761_v37, %v762_v38  ;;  %v782_v43 = vadd.f32 %v781_v39, %v780_v35 }
 0x1fe   : > { %v785_v44 = vsel %vm737_vm3, %v1344_v40, 0.0 }
 0x1ff   : > { %v786_v45 = vrot.slane %v785_v44, 4  ;;  %1345 = vpow2.f32 %v774_v41  ;;  %v764_v46 = vrot.slane %v763_v42, 1  ;;  %v783_v47 = vrot.slane %v782_v43, 1 }
 0x201   : > { %v787_v48 = vadd.f32 %v786_v45, %v785_v44  ;;  %v765_v49 = vmax.f32 %v763_v42, %v764_v46  ;;  %v784_v50 = vadd.f32 %v783_v47, %v782_v43 }
 0x203   : > { %v788_v51 = vrot.slane %v787_v48, 2  ;;  %v769_v52 = vsub.f32 %v736_v25, %v765_v49  ;;  %1347 = vrcp.f32 %v784_v50  ;;  %v892_v25 = vld [vmem:[%s1905_s9] sm:$0xff]  ;;  %v700_v30 = vpop.f32.mrf.mxu1 }
 0x204   : > { %923 = vmatpush.msra.mxu3 %v892_v25  ;;  %v701_v36 = vadd.f32 %v1328_v20, %v700_v30 }
 0x205   : > { %v1346_v53 = vpop.eup %1345  ;;  %v776_v54 = vmul.f32 1.442695, %v769_v52  ;;  %v789_v55 = vadd.f32 %v788_v51, %v787_v48 }
 0x206   : > { %v792_v56 = vsel %vm737_vm3, %v1346_v53, 0.0  ;;  %1227 = vmatpush.msk.msrb.mxu3 %vm827_vm4, %v1808_v7 }
 0x207   : > { %v793_v31 = vrot.slane %v792_v56, 4  ;;  %1349 = vpow2.f32 %v776_v54  ;;  %v790_v57 = vrot.slane %v789_v55, 1 }
 0x209   : > { %v1348_v21 = vpop.eup %1347  ;;  %v794_v58 = vadd.f32 %v793_v31, %v792_v56  ;;  %v791_v59 = vadd.f32 %v790_v57, %v789_v55 }
 0x20a   : > { %v810_v60 = vmul.f32 %v1348_v21, %v1342_v26  ;;  %v696_v26 = vadd.f32 %v1328_v20, %v695_v16 }
 0x20b   : > { %v795_v61 = vrot.slane %v794_v58, 2  ;;  %1351 = vrcp.f32 %v791_v59  ;;  %v702_v41 = vpop.f32.mrf.mxu1 }
 0x20c   : > { %1222 = vmatmul.msk.f32.vlgmr.msra.gmra.mxu2 %vm737_vm3, %v810_v60  ;;  %v703_v46 = vadd.f32 %v1328_v20, %v702_v41 }
 0x20d   : > { %v1350_v62 = vpop.eup %1349  ;;  %v796_v63 = vadd.f32 %v795_v61, %v794_v58 }
 0x20e   : > { %v799_v0 = vsel %vm737_vm3, %v1350_v62, 0.0 }
 0x20f   : > { %v800_v1 = vrot.slane %v799_v0, 4  ;;  %v797_v2 = vrot.slane %v796_v63, 1 }
 0x211   : > { %v1352_v3 = vpop.eup %1351  ;;  %v801_v4 = vadd.f32 %v800_v1, %v799_v0  ;;  %v798_v5 = vadd.f32 %v797_v2, %v796_v63 }
 0x212   : > { %v811_v6 = vmul.f32 %v1352_v3, %v1344_v40 }
 0x213   : > { %1353 = vrcp.f32 %v798_v5  ;;  %v802_v8 = vrot.slane %v801_v4, 2 }
 0x214   : > { %1223 = vmatmul.msk.f32.gmra.mxu2 %vm737_vm3, %v811_v6 }
 0x215   : > { %v803_v9 = vadd.f32 %v802_v8, %v801_v4 }
 0x217   : > { %v804_v10 = vrot.slane %v803_v9, 1 }
 0x219   : > { %v1354_v11 = vpop.eup %1353  ;;  %v805_v12 = vadd.f32 %v804_v10, %v803_v9 }
 0x21a   : > { %v812_v13 = vmul.f32 %v1354_v11, %v1346_v53 }
 0x21b   : > { %1355 = vrcp.f32 %v805_v12 }
 0x21c   : > { %1224 = vmatmul.msk.f32.gmra.mxu2 %vm737_vm3, %v812_v13 }
 0x221   : > { %v1356_v14 = vpop.eup %1355 }
 0x222   : > { %v813_v15 = vmul.f32 %v1356_v14, %v1350_v62 }
 0x224   : > { %1225 = vmatmul.msk.f32.gmra.mxu2 %vm737_vm3, %v813_v15 }
 0x28f   : > { %v848_v18 = vpop.f32.mrf.mxu2 }
 0x290   : > { %v860_v29 = vmul.f32 %v848_v18, %v696_v26 }
 0x292   : > { %v864_v34 = vsel %vm509_vm0, %v860_v29, 0.0 }
 0x293   : > { %v865_v37 = vrot.slane %v864_v34, 4 }
 0x295   : > { %v866_v42 = vadd.f32 %v865_v37, %v864_v34  ;;  %v1329_v37 = vld [vmem:[%s1906_s10] ss:$0 sm:$0xff] }
 0x297   : > { %v851_v28 = vpop.f32.mrf.mxu2  ;;  %v867_v47 = vrot.slane %v866_v42, 2 }
 0x298   : > { %v861_v22 = vmul.f32 %v851_v28, %v698_v27 }
 0x299   : > { %v868_v54 = vadd.f32 %v867_v47, %v866_v42  ;;  %v1330_v42 = vld [vmem:[%s1936_s13] ss:$0 sm:$0xff] }
 0x29a   : > { %v871_v33 = vsel %vm509_vm0, %v861_v22, 0.0 }
 0x29b   : > { %v872_v35 = vrot.slane %v871_v33, 4  ;;  %v869_v21 = vrot.slane %v868_v54, 1 }
 0x29d   : > { %v873_v39 = vadd.f32 %v872_v35, %v871_v33  ;;  %v870_v62 = vadd.f32 %v869_v21, %v868_v54 }
 0x29f   : > { %v854_v32 = vpop.f32.mrf.mxu2  ;;  %v874_v44 = vrot.slane %v873_v39, 2 }
 0x2a0   : > { %v862_v38 = vmul.f32 %v854_v32, %v701_v36 }
 0x2a1   : > { %v875_v51 = vadd.f32 %v874_v44, %v873_v39 }
 0x2a2   : > { %v878_v40 = vsel %vm509_vm0, %v862_v38, 0.0 }
 0x2a3   : > { %v879_v43 = vrot.slane %v878_v40, 4  ;;  %v876_v56 = vrot.slane %v875_v51, 1 }
 0x2a5   : > { %v880_v45 = vadd.f32 %v879_v43, %v878_v40  ;;  %v877_v59 = vadd.f32 %v876_v56, %v875_v51 }
 0x2a7   : > { %v881_v48 = vrot.slane %v880_v45, 2  ;;  %v857_v49 = vpop.f32.mrf.mxu2  ;;  %v901_v1 = vsel %vm900_vm5, %v877_v59, %v870_v62 }
 0x2a8   : > { %v863_v50 = vmul.f32 %v857_v49, %v703_v46 }
 0x2a9   : > { %v882_v52 = vadd.f32 %v881_v48, %v880_v45 }
 0x2aa   : > { %v885_v53 = vsel %vm509_vm0, %v863_v50, 0.0 }
 0x2ab   : > { %v886_v55 = vrot.slane %v885_v53, 4  ;;  %v883_v57 = vrot.slane %v882_v52, 1 }
 0x2ad   : > { %v887_v31 = vadd.f32 %v886_v55, %v885_v53  ;;  %v884_v61 = vadd.f32 %v883_v57, %v882_v52 }
 0x2af   : > { %v888_v58 = vrot.slane %v887_v31, 2  ;;  %v903_v2 = vsel %vm902_vm6, %v884_v61, %v901_v1 }
 0x2b1   : > { %v889_v60 = vadd.f32 %v888_v58, %v887_v31 }
 0x2b3   : > { %v890_v63 = vrot.slane %v889_v60, 1 }
 0x2b5   : > { %v891_v0 = vadd.f32 %v890_v63, %v889_v60 }
 0x2b7   : > { %v905_v3 = vsel %vm904_vm7, %v891_v0, %v903_v2 }
 0x2b8   : > { %1226 = vmatmul.msk.f32.vlgmr.msra.gmra.mxu3 %vm509_vm0, %v905_v3 }
 0x2b9   : > { %992 = vmatpush.msra.mxu3 %v895_v19 }
 0x2bb   : > { %993 = vmatpush.msra.mxu3 %v894_v23 }
 0x2bd   : > { %994 = vmatpush.msra.mxu3 %v893_v24 }
 0x2bf   : > { %995 = vmatpush.msra.mxu3 %v892_v25 }
 0x33b   : > { %v925_v4 = vpop.f32.mrf.mxu3 }
 0x33c   : > { %v928_v5 = vmul.f32 0.125, %v925_v4 }
 0x33e   : > { %1228 = vmatmul.msk.f32.vlgmr.msrb.gmra.mxu3 %vm737_vm3, %v928_v5 }
 0x33f   : > { %1230 = vmatpush.msk.msrb.mxu3 %vm827_vm4, %v1808_v7 }
 0x3c1   : > { %v949_v6 = vpop.f32.mrf.mxu3 }
 0x3c2   : > { %v953_v8 = vrot.slane %v949_v6, 1  ;;  %v954_v9 = vrot.slane %v949_v6, 2  ;;  %v955_v10 = vrot.slane %v949_v6, 3  ;;  %v960_v11 = vsub.f32 %v870_v62, %v949_v6 }
 0x3c4   : > { %v961_v12 = vsub.f32 %v877_v59, %v953_v8  ;;  %v962_v13 = vsub.f32 %v884_v61, %v954_v9  ;;  %v963_v14 = vsub.f32 %v891_v0, %v955_v10  ;;  %v964_v18 = vmul.f32 %v960_v11, %v960_v11 }
 0x3c6   : > { %v965_v15 = vmul.f32 %v961_v12, %v961_v12  ;;  %v966_v16 = vmul.f32 %v962_v13, %v962_v13  ;;  %v967_v17 = vmul.f32 %v963_v14, %v963_v14 }
 0x3c8   : > { %v972_v19 = vrot.slane %v965_v15, 7  ;;  %v974_v20 = vrot.slane %v966_v16, 6  ;;  %v976_v24 = vrot.slane %v967_v17, 5 }
 0x3ca   : > { %v973_v23 = vsel %vm900_vm5, %v972_v19, %v964_v18 }
 0x3cb   : > { %v975_v25 = vsel %vm902_vm6, %v974_v20, %v973_v23 }
 0x3cc   : > { %v977_v7 = vsel %vm904_vm7, %v976_v24, %v975_v25 }
 0x3cd   : > { %1229 = vmatmul.msk.f32.vlgmr.msra.gmra.mxu3 %vm509_vm0, %v977_v7  ;;  %vm1063_vm0 = vcmask 253952  }
 0x450   : > { %v997_v26 = vpop.f32.mrf.mxu3 }
 0x451   : > { %v1000_v27 = vmul.f32 0.125, %v997_v26 }
 0x453   : > { %v1001_v28 = vadd.f32 1e-06, %v1000_v27 }
 0x455   : > { %1357 = vrsqrt.f32 %v1001_v28  ;;  %vm1008_vm9 = vweird.f32 %v1001_v28 }
 0x45b   : > { %v1358_v29 = vpop.eup %1357 }
 0x45c   : > { %v1003_v22 = vmul.f32 %v1358_v29, %v1001_v28  ;;  %vm1009_vm8 = vweird.f32 %v1358_v29 }
 0x45d   : > { %vm1010_vm10 = vmor %vm1008_vm9, %vm1009_vm8 }
 0x45e   : > { %v1004_v30 = vmul.f32 %v1358_v29, %v1003_v22 }
 0x460   : > { %v1005_v33 = vmul.f32 0.5, %v1004_v30 }
 0x462   : > { %v1006_v34 = vsub.f32 1.5, %v1005_v33 }
 0x464   : > { %v1007_v35 = vmul.f32 %v1358_v29, %v1006_v34 }
 0x466   : > { %v1011_v36 = vsel %vm1010_vm10, %v1358_v29, %v1007_v35 }
 0x467   : > { %1231 = vmatmul.msk.f32.vlgmr.msrb.gmra.mxu3 %vm737_vm3, %v1011_v36 }
 0x4ea   : > { %v1032_v32 = vpop.f32.mrf.mxu3 }
 0x4eb   : > { %v1036_v38 = vrot.slane %v1032_v32, 1  ;;  %v1037_v39 = vrot.slane %v1032_v32, 2  ;;  %v1038_v40 = vrot.slane %v1032_v32, 3  ;;  %v1043_v41 = vmul.f32 %v1032_v32, %v960_v11 }
 0x4ed   : > { %v1044_v43 = vmul.f32 %v1036_v38, %v961_v12  ;;  %v1045_v44 = vmul.f32 %v1037_v39, %v962_v13  ;;  %v1046_v45 = vmul.f32 %v1038_v40, %v963_v14  ;;  %v1051_v46 = vmul.f32 %v1329_v37, %v1043_v41 }
 0x4ef   : > { %v1052_v47 = vmul.f32 %v1329_v37, %v1044_v43  ;;  %v1053_v48 = vmul.f32 %v1329_v37, %v1045_v44  ;;  %v1054_v49 = vmul.f32 %v1329_v37, %v1046_v45  ;;  %v1059_v50 = vadd.f32 %v1330_v42, %v1051_v46 }
 0x4f1   : > { %v1060_v51 = vadd.f32 %v1330_v42, %v1052_v47  ;;  %v1061_v52 = vadd.f32 %v1330_v42, %v1053_v48  ;;  %v1062_v53 = vadd.f32 %v1330_v42, %v1054_v49  ;;  %1064 = vst.msk [vmem:[%s477_s7] sm:$0x1] %vm1063_vm0, %v1059_v50 }
 0x4f3   : > { %1065 = vst.msk [vmem:[%s477_s7 + $0x1] sm:$0x1] %vm1063_vm0, %v1060_v51 }
 0x4f4   : > { %1066 = vst.msk [vmem:[%s477_s7 + $0x2] sm:$0x1] %vm1063_vm0, %v1061_v52 }
 0x4f5   : > { %1067 = vst.msk [vmem:[%s477_s7 + $0x3] sm:$0x1] %vm1063_vm0, %v1062_v53 }
 0x4f6   : > { %1476 = shalt.err (!%p1473_p9)
}
 0x4f7   : > { %s1527_s26 = smov 16   ;;  %s1528_s12 = smov 1  }
 0x4f8   : > { %1259 = dma.vmem_to_hbm [thread:$0]  (%p1646_p11), %s1081_s14, 64, %s1083_s28, %s1069_s5, %s1527_s26, %s1527_s26, %s1528_s12  }
 0x4f9 PF: > { %s1938_s18 = sld [smem:[#allocation12_spill]]  ;;  %p1940_p10 = scmp.ge.s32.totalorder %s1519_s24, 2 }
 0x4fb   : > { %p1273_p1 = pnand %p1940_p10, %p1650_p12 }
 0x4fd   : > { %p1274_p2 = pneg %p1273_p1 }
 0x4ff   : > { %s1097_s20 = sand.u32 1, %s1938_s18  }
 0x500   : > { %s1098_s13 = scalar_lea.sflag [#allocation4], %s1097_s20 }
 0x501   : > { %1502 = dma.done.wait (%p1274_p2), %s1098_s13, 64  }
 0x502   : > { %1504 = vsyncadd (%p1274_p2), %s1098_s13, 4294967232  ;;  %s1941_s24 = sld [smem:[#allocation13_spill]]  ;;  %s1943_s21 = smov %s1511_s22 }
 0x503   : > { %s1942_s7 = sld [smem:[#allocation14_spill]]  ;;  %s1944_s22 = smov %s1515_s23 }
 0x508   : > { %p26_p3 = scmp.ge.s32.totalorder %s1941_s24, 4  }
 0x509   : > { %s1945_s23 = smov %s1942_s7 }
 0x50a   :  { %28 = sbr.rel (!%p26_p3) target bundleno = 11 (0xb), region = 124 }
 0x50f   :  { %1104 = vsyncpa [#allocation3], 1 }
 0x510   :  { %1106 = vsyncpa [#allocation3 + $0x1], 1 }
 0x511   :  { %1107 = vsyncpa [#allocation6], 1 }
 0x512   :  { %1108 = vsyncpa [#allocation4], 1 }
 0x513   :  { %1110 = vsyncpa [#allocation4 + $0x1], 1 }

</bundles_post_ra>
